<compile_context>
chip_gen: v6e
topology: v6e:2x2x1
jax: 0.10.0
libtpu: 0.0.40
codegen_flags: <defaults>
</compile_context>

<pallas_src>
import functools

import jax
import jax.numpy as jnp
from jax.experimental import pallas as pl
from jax.experimental.pallas import tpu as pltpu


def pointer_kernel(ids_ref, attn_ref, hs_ref, vp_ref, w1_ref, w2_ref, bias_ref,
                   out_ref, pgen_ref, coef_sc, pgen_sc, *, scatter_dtype):
    v_idx = pl.program_id(2)

    # ---- once per (b, t-tile): small projections + coef cache --------------
    @pl.when(v_idx == 0)
    def _():
        hs = hs_ref[0].astype(jnp.float32)        # [Tt, H]
        attn = attn_ref[0].astype(jnp.float32)    # [Tt, A, E] (lane-dense E)
        b1 = bias_ref[0, 0]
        b2 = bias_ref[0, 1]

        # p_gen = sigmoid(hs @ W1 + b1)  -> [Tt, 1]
        p_gen = jax.nn.sigmoid(
            jnp.sum(hs * w1_ref[...], axis=-1, keepdims=True) + b1)
        # iva = sigmoid(attn @ W2 + b2)  -> [Tt, E]  (reduce over A, sublanes)
        iva = jax.nn.sigmoid(jnp.sum(attn * w2_ref[...], axis=1) + b2)

        pgen_sc[...] = p_gen
        coef_sc[...] = ((1.0 - p_gen) * iva).astype(coef_sc.dtype)
        pgen_ref[0] = p_gen                        # extra output (pgen_list)

    # ---- every V tile: scatter_add as a one-hot matmul on the MXU ----------
    ids = ids_ref[0]                               # [E, 1] int32
    e_len = ids.shape[0]
    v_tile = out_ref.shape[-1]
    vocab_iota = (jax.lax.broadcasted_iota(jnp.int32, (e_len, v_tile), 1)
                  + v_idx * v_tile)
    onehot = (ids == vocab_iota).astype(scatter_dtype)          # [E, Vt] exact
    scat = jnp.dot(coef_sc[...], onehot,
                   preferred_element_type=jnp.float32)          # [Tt, Vt]

    vp = vp_ref[0].astype(jnp.float32)
    out_ref[0] = (pgen_sc[...] * vp + scat).astype(out_ref.dtype)


def pointer_forward(input_ids, attentions, hidden_states, vocab_probs,
                    w1, b1, w2, b2, *, t_tile=None, v_tile=None,
                    scatter_dtype=jnp.bfloat16):
    """Returns (output [B, T, V], min_p_gen scalar)."""
    unbatched = hidden_states.ndim == 2
    if unbatched:
        input_ids = input_ids[None]
        attentions = attentions[None]
        hidden_states = hidden_states[None]
        vocab_probs = vocab_probs[None]

    B, T, H = hidden_states.shape
    _, _, E, A = attentions.shape
    V = vocab_probs.shape[-1]

    # Tile selection: Vt multiple of 128 (MXU/lane width), Tt multiple of 8.
    # TODO(synk): on v7x (64 MiB VMEM) keep attn + vp/out tiles under ~24 MiB,
    # and add an E-reduction grid axis (accumulate scat in scratch) for very
    # long encoder inputs where the [Tt, A, E] attention block itself is large.
    if t_tile is None:
        t_tile = T if (T <= 128 or T % 128 != 0) else 128
    if v_tile is None:
        v_tile = V if (V <= 512 or V % 512 != 0) else 512
    assert T % t_tile == 0 and (t_tile % 8 == 0 or t_tile == T)
    assert V % v_tile == 0 and (v_tile % 128 == 0 or v_tile == V)

    # Glue (plain JAX): kernel-friendly layouts.
    ids_col = input_ids.astype(jnp.int32).reshape(B, E, 1)
    # Lane-dense attention layout [B, T, A, E].  TODO(synk): ideally the caller
    # provides this layout directly so the XLA transpose is avoided.
    attn_t = jnp.transpose(attentions, (0, 1, 3, 2))
    w1_row = w1.reshape(1, H).astype(jnp.float32)
    w2_col = w2.reshape(1, A, 1).astype(jnp.float32)
    bias = jnp.concatenate([b1.reshape(1), b2.reshape(1)]).reshape(1, 2)
    bias = bias.astype(jnp.float32)

    grid = (B, T // t_tile, V // v_tile)

    out, p_gen = pl.pallas_call(
        functools.partial(pointer_kernel, scatter_dtype=scatter_dtype),
        out_shape=(jax.ShapeDtypeStruct((B, T, V), vocab_probs.dtype),
                   jax.ShapeDtypeStruct((B, T, 1), jnp.float32)),
        grid_spec=pltpu.PrefetchScalarGridSpec(
            num_scalar_prefetch=0,
            grid=grid,
            in_specs=[
                pl.BlockSpec((1, E, 1), lambda b, t, v: (b, 0, 0)),        # ids
                pl.BlockSpec((1, t_tile, A, E),
                             lambda b, t, v: (b, t, 0, 0)),                # attn (resident over V)
                pl.BlockSpec((1, t_tile, H), lambda b, t, v: (b, t, 0)),   # hidden states
                pl.BlockSpec((1, t_tile, v_tile),
                             lambda b, t, v: (b, t, v)),                   # vocab probs
                pl.BlockSpec((1, H), lambda b, t, v: (0, 0)),              # w1
                pl.BlockSpec((1, A, 1), lambda b, t, v: (0, 0, 0)),        # w2
                pl.BlockSpec(memory_space=pltpu.MemorySpace.SMEM),         # biases (scalars)
            ],
            out_specs=[
                pl.BlockSpec((1, t_tile, v_tile), lambda b, t, v: (b, t, v)),
                pl.BlockSpec((1, t_tile, 1), lambda b, t, v: (b, t, 0)),
            ],
            scratch_shapes=[
                pltpu.VMEM((t_tile, E), scatter_dtype),   # coef cache
                pltpu.VMEM((t_tile, 1), jnp.float32),     # p_gen cache
            ],
        ),
        compiler_params=pltpu.CompilerParams(
            dimension_semantics=("parallel", "parallel", "arbitrary")),
    )(ids_col, attn_t, hidden_states, vocab_probs, w1_row, w2_col, bias)

    min_p_gen = jnp.min(p_gen)   # caller appends .item() to pgen_list host-side
    if unbatched:
        out = out[0]
    return out, min_p_gen


def pointer_reference(input_ids, attentions, hidden_states, vocab_probs,
                      w1, b1, w2, b2):
    # Pure-JAX reference mirroring the PyTorch forward.
    p_gen = jax.nn.sigmoid(hidden_states @ w1.reshape(-1, 1) + b1)           # [B,T,1]
    iva = jax.nn.sigmoid(jnp.einsum('btea,a->bte', attentions, w2) + b2[0])  # [B,T,E]
    onehot = jax.nn.one_hot(input_ids, vocab_probs.shape[-1],
                            dtype=jnp.float32)                               # [B,E,V]
    scat = jnp.einsum('bte,bev->btv', (1.0 - p_gen) * iva, onehot)
    return p_gen * vocab_probs + scat, jnp.min(p_gen)


if __name__ == "__main__":
    key = jax.random.PRNGKey(0)
    B, T, E, H, A, V = 2, 16, 16, 32, 16, 1024
    ks = jax.random.split(key, 8)

    input_ids = jax.random.randint(ks[0], (B, E), 0, V, dtype=jnp.int32)
    attentions = jax.random.normal(ks[1], (B, T, E, A), dtype=jnp.float32)
    hidden_states = jax.random.normal(ks[2], (B, T, H), dtype=jnp.float32)
    vocab_probs = jax.nn.softmax(
        jax.random.normal(ks[3], (B, T, V), dtype=jnp.float32), axis=-1)

    # Linear(H,1) and Linear(A,1) weights + biases.
    w1 = 0.1 * jax.random.normal(ks[4], (H,), dtype=jnp.float32)
    b1 = 0.1 * jax.random.normal(ks[5], (1,), dtype=jnp.float32)
    w2 = 0.1 * jax.random.normal(ks[6], (A,), dtype=jnp.float32)
    b2 = 0.1 * jax.random.normal(ks[7], (1,), dtype=jnp.float32)

    # Exact f32 scatter path (grid = (2, 2, 2): B x T-tiles x V-tiles).
    out_f32, min_pg = pointer_forward(
        input_ids, attentions, hidden_states, vocab_probs, w1, b1, w2, b2,
        t_tile=8, v_tile=512, scatter_dtype=jnp.float32)
    # bf16 MXU scatter path (performance default on v6e/v7x).
    out_bf16, _ = pointer_forward(
        input_ids, attentions, hidden_states, vocab_probs, w1, b1, w2, b2,
        t_tile=8, v_tile=512, scatter_dtype=jnp.bfloat16)
    out_f32, out_bf16, min_pg = jax.block_until_ready((out_f32, out_bf16, min_pg))

    ref_out, ref_min = pointer_reference(
        input_ids, attentions, hidden_states, vocab_probs, w1, b1, w2, b2)

    assert out_f32.shape == (B, T, V)
    assert jnp.allclose(out_f32, ref_out, atol=1e-5, rtol=1e-5), "f32 mismatch"
    # coef is rounded to bf16 (~4e-3 relative) in the bf16 scatter path.
    assert jnp.allclose(out_bf16, ref_out, atol=1e-2, rtol=1e-2), "bf16 mismatch"
    assert jnp.allclose(min_pg, ref_min, atol=1e-6), "min(p_gen) mismatch"
    print("KERNEL_OK")
</pallas_src>

<mosaic_0001>
module attributes {stable_mosaic.version = 11 : i64} {
  func.func @pointer_kernel(%arg0: i32, %arg1: i32, %arg2: i32, %arg3: memref<1x16x1xi32, #tpu.memory_space<vmem>>, %arg4: memref<1x8x16x16xf32, #tpu.memory_space<vmem>>, %arg5: memref<1x8x32xf32, #tpu.memory_space<vmem>>, %arg6: memref<1x8x512xf32, #tpu.memory_space<vmem>>, %arg7: memref<1x32xf32, #tpu.memory_space<vmem>>, %arg8: memref<1x16x1xf32, #tpu.memory_space<vmem>>, %arg9: memref<1x2xf32, #tpu.memory_space<smem>>, %arg10: memref<1x8x512xf32, #tpu.memory_space<vmem>>, %arg11: memref<1x8x1xf32, #tpu.memory_space<vmem>>, %arg12: memref<8x16xf32, #tpu.memory_space<vmem>>, %arg13: memref<8x1xf32, #tpu.memory_space<vmem>>) attributes {dimension_semantics = [#tpu.dimension_semantics<parallel>, #tpu.dimension_semantics<parallel>, #tpu.dimension_semantics<arbitrary>], iteration_bounds = array<i64: 2, 2, 2>, scalar_prefetch = 0 : i64, scratch_operands = 2 : i64, tpu.core_type = #tpu.core_type<tc>, window_params = [{transform_indices = @transform_0, window_bounds = array<i64: 1, 16, 1>}, {transform_indices = @transform_1, window_bounds = array<i64: 1, 8, 16, 16>}, {transform_indices = @transform_2, window_bounds = array<i64: 1, 8, 32>}, {transform_indices = @transform_3, window_bounds = array<i64: 1, 8, 512>}, {pipeline_mode = #tpu.pipeline_mode<synchronous>, transform_indices = @transform_4, window_bounds = array<i64: 1, 32>}, {pipeline_mode = #tpu.pipeline_mode<synchronous>, transform_indices = @transform_5, window_bounds = array<i64: 1, 16, 1>}, {transform_indices = @transform_6, window_bounds = array<i64: 1, 2>}, {transform_indices = @transform_7, window_bounds = array<i64: 1, 8, 512>}, {transform_indices = @transform_8, window_bounds = array<i64: 1, 8, 1>}]} {
    %c0_i32 = arith.constant 0 : i32
    %0 = arith.cmpi eq, %arg2, %c0_i32 : i32
    %1 = arith.extui %0 : i1 to i32
    %c0_i32_0 = arith.constant 0 : i32
    %2 = arith.cmpi ne, %1, %c0_i32_0 : i32
    scf.if %2 {
      %c0_13 = arith.constant 0 : index
      %c0_14 = arith.constant 0 : index
      %c0_15 = arith.constant 0 : index
      %24 = vector.load %arg5[%c0_13, %c0_14, %c0_15] : memref<1x8x32xf32, #tpu.memory_space<vmem>>, vector<1x8x32xf32>
      %25 = vector.shape_cast %24 : vector<1x8x32xf32> to vector<8x32xf32>
      %c0_16 = arith.constant 0 : index
      %c0_17 = arith.constant 0 : index
      %c0_18 = arith.constant 0 : index
      %c0_19 = arith.constant 0 : index
      %26 = vector.load %arg4[%c0_16, %c0_17, %c0_18, %c0_19] : memref<1x8x16x16xf32, #tpu.memory_space<vmem>>, vector<1x8x16x16xf32>
      %27 = vector.shape_cast %26 : vector<1x8x16x16xf32> to vector<8x16x16xf32>
      %c0_20 = arith.constant 0 : index
      %c0_21 = arith.constant 0 : index
      %28 = memref.load %arg9[%c0_20, %c0_21] : memref<1x2xf32, #tpu.memory_space<smem>>
      %c0_22 = arith.constant 0 : index
      %c1 = arith.constant 1 : index
      %29 = memref.load %arg9[%c0_22, %c1] : memref<1x2xf32, #tpu.memory_space<smem>>
      %c0_23 = arith.constant 0 : index
      %c0_24 = arith.constant 0 : index
      %30 = vector.load %arg7[%c0_23, %c0_24] : memref<1x32xf32, #tpu.memory_space<vmem>>, vector<1x32xf32>
      %31 = vector.broadcast %30 : vector<1x32xf32> to vector<8x32xf32>
      %32 = arith.mulf %25, %31 : vector<8x32xf32>
      %cst_25 = arith.constant dense<0.000000e+00> : vector<8xf32>
      %33 = vector.multi_reduction <add>, %32, %cst_25 [1] : vector<8x32xf32> to vector<8xf32>
      %34 = vector.shape_cast %33 : vector<8xf32> to vector<8x1xf32>
      %35 = vector.broadcast %28 : f32 to vector<8x1xf32>
      %36 = arith.addf %34, %35 : vector<8x1xf32>
      %37 = arith.negf %36 : vector<8x1xf32>
      %38 = math.exp %37 : vector<8x1xf32>
      %cst_26 = arith.constant 1.000000e+00 : f32
      %39 = vector.broadcast %cst_26 : f32 to vector<8x1xf32>
      %40 = arith.addf %39, %38 : vector<8x1xf32>
      %41 = arith.divf %39, %40 : vector<8x1xf32>
      %c0_27 = arith.constant 0 : index
      %c0_28 = arith.constant 0 : index
      %c0_29 = arith.constant 0 : index
      %42 = vector.load %arg8[%c0_27, %c0_28, %c0_29] : memref<1x16x1xf32, #tpu.memory_space<vmem>>, vector<1x16x1xf32>
      %43 = vector.broadcast %42 : vector<1x16x1xf32> to vector<8x16x16xf32>
      %44 = arith.mulf %27, %43 : vector<8x16x16xf32>
      %cst_30 = arith.constant dense<0.000000e+00> : vector<8x16xf32>
      %45 = vector.multi_reduction <add>, %44, %cst_30 [1] : vector<8x16x16xf32> to vector<8x16xf32>
      %46 = vector.broadcast %29 : f32 to vector<8x16xf32>
      %47 = arith.addf %45, %46 : vector<8x16xf32>
      %48 = arith.negf %47 : vector<8x16xf32>
      %49 = math.exp %48 : vector<8x16xf32>
      %cst_31 = arith.constant 1.000000e+00 : f32
      %50 = vector.broadcast %cst_31 : f32 to vector<8x16xf32>
      %51 = arith.addf %50, %49 : vector<8x16xf32>
      %52 = arith.divf %50, %51 : vector<8x16xf32>
      %c0_32 = arith.constant 0 : index
      %c0_33 = arith.constant 0 : index
      %53 = vector.load %arg13[%c0_32, %c0_33] : memref<8x1xf32, #tpu.memory_space<vmem>>, vector<8x1xf32>
      tpu.vector_store %arg13[%c0_32, %c0_33], %41 {strides = array<i32>} : memref<8x1xf32, #tpu.memory_space<vmem>>, vector<8x1xf32>,
      %cst_34 = arith.constant 1.000000e+00 : f32
      %54 = vector.broadcast %cst_34 : f32 to vector<8x1xf32>
      %55 = arith.subf %54, %41 : vector<8x1xf32>
      %56 = vector.broadcast %55 : vector<8x1xf32> to vector<8x16xf32>
      %57 = arith.mulf %56, %52 : vector<8x16xf32>
      %c0_35 = arith.constant 0 : index
      %c0_36 = arith.constant 0 : index
      %58 = vector.load %arg12[%c0_35, %c0_36] : memref<8x16xf32, #tpu.memory_space<vmem>>, vector<8x16xf32>
      tpu.vector_store %arg12[%c0_35, %c0_36], %57 {strides = array<i32>} : memref<8x16xf32, #tpu.memory_space<vmem>>, vector<8x16xf32>,
      %c0_37 = arith.constant 0 : index
      %c0_38 = arith.constant 0 : index
      %c0_39 = arith.constant 0 : index
      %59 = vector.load %arg11[%c0_37, %c0_38, %c0_39] : memref<1x8x1xf32, #tpu.memory_space<vmem>>, vector<1x8x1xf32>
      %60 = vector.shape_cast %59 : vector<1x8x1xf32> to vector<8x1xf32>
      %61 = vector.shape_cast %41 : vector<8x1xf32> to vector<1x8x1xf32>
      tpu.vector_store %arg11[%c0_37, %c0_38, %c0_39], %61 {strides = array<i32>} : memref<1x8x1xf32, #tpu.memory_space<vmem>>, vector<1x8x1xf32>,
    } else {
    }
    %c0 = arith.constant 0 : index
    %c0_1 = arith.constant 0 : index
    %c0_2 = arith.constant 0 : index
    %3 = vector.load %arg3[%c0, %c0_1, %c0_2] : memref<1x16x1xi32, #tpu.memory_space<vmem>>, vector<1x16x1xi32>
    %4 = vector.shape_cast %3 : vector<1x16x1xi32> to vector<16x1xi32>
    %5 = tpu.iota {dimensions = array<i32: 1>} : vector<16x512xi32>
    %c512_i32 = arith.constant 512 : i32
    %6 = arith.muli %arg2, %c512_i32 : i32
    %7 = vector.broadcast %6 : i32 to vector<16x512xi32>
    %8 = arith.addi %5, %7 : vector<16x512xi32>
    %9 = vector.broadcast %4 : vector<16x1xi32> to vector<16x512xi32>
    %10 = arith.cmpi eq, %9, %8 : vector<16x512xi32>
    %11 = arith.extui %10 : vector<16x512xi1> to vector<16x512xi32>
    %12 = arith.sitofp %11 : vector<16x512xi32> to vector<16x512xf32>
    %c0_3 = arith.constant 0 : index
    %c0_4 = arith.constant 0 : index
    %13 = vector.load %arg12[%c0_3, %c0_4] : memref<8x16xf32, #tpu.memory_space<vmem>>, vector<8x16xf32>
    %cst = arith.constant dense<0.000000e+00> : vector<8x512xf32>
    %14 = tpu.matmul %13, %12, %cst {dimension_numbers = #tpu.dot_dimension_numbers<[1], [0], [0], [1], [0, 0, 1, 1], [], []>} : vector<8x16xf32>, vector<16x512xf32>, vector<8x512xf32> -> vector<8x512xf32>
    %c0_5 = arith.constant 0 : index
    %c0_6 = arith.constant 0 : index
    %c0_7 = arith.constant 0 : index
    %15 = vector.load %arg6[%c0_5, %c0_6, %c0_7] : memref<1x8x512xf32, #tpu.memory_space<vmem>>, vector<1x8x512xf32>
    %16 = vector.shape_cast %15 : vector<1x8x512xf32> to vector<8x512xf32>
    %c0_8 = arith.constant 0 : index
    %c0_9 = arith.constant 0 : index
    %17 = vector.load %arg13[%c0_8, %c0_9] : memref<8x1xf32, #tpu.memory_space<vmem>>, vector<8x1xf32>
    %18 = vector.broadcast %17 : vector<8x1xf32> to vector<8x512xf32>
    %19 = arith.mulf %18, %16 : vector<8x512xf32>
    %20 = arith.addf %19, %14 : vector<8x512xf32>
    %c0_10 = arith.constant 0 : index
    %c0_11 = arith.constant 0 : index
    %c0_12 = arith.constant 0 : index
    %21 = vector.load %arg10[%c0_10, %c0_11, %c0_12] : memref<1x8x512xf32, #tpu.memory_space<vmem>>, vector<1x8x512xf32>
    %22 = vector.shape_cast %21 : vector<1x8x512xf32> to vector<8x512xf32>
    %23 = vector.shape_cast %20 : vector<8x512xf32> to vector<1x8x512xf32>
    tpu.vector_store %arg10[%c0_10, %c0_11, %c0_12], %23 {strides = array<i32>} : memref<1x8x512xf32, #tpu.memory_space<vmem>>, vector<1x8x512xf32>,
    return
  }
  func.func @transform_0(%arg0: i32, %arg1: i32, %arg2: i32) -> (i32, i32, i32) {
    %c0_i32 = arith.constant 0 : i32
    %c0_i32_0 = arith.constant 0 : i32
    %c0_i32_1 = arith.constant 0 : i32
    return %arg0, %c0_i32, %c0_i32_0 : i32, i32, i32
  }
  func.func @transform_1(%arg0: i32, %arg1: i32, %arg2: i32) -> (i32, i32, i32, i32) {
    %c0_i32 = arith.constant 0 : i32
    %c0_i32_0 = arith.constant 0 : i32
    %c0_i32_1 = arith.constant 0 : i32
    return %arg0, %arg1, %c0_i32, %c0_i32_0 : i32, i32, i32, i32
  }
  func.func @transform_2(%arg0: i32, %arg1: i32, %arg2: i32) -> (i32, i32, i32) {
    %c0_i32 = arith.constant 0 : i32
    %c0_i32_0 = arith.constant 0 : i32
    return %arg0, %arg1, %c0_i32 : i32, i32, i32
  }
  func.func @transform_3(%arg0: i32, %arg1: i32, %arg2: i32) -> (i32, i32, i32) {
    %c0_i32 = arith.constant 0 : i32
    return %arg0, %arg1, %arg2 : i32, i32, i32
  }
  func.func @transform_4(%arg0: i32, %arg1: i32, %arg2: i32) -> (i32, i32) {
    %c0_i32 = arith.constant 0 : i32
    %c0_i32_0 = arith.constant 0 : i32
    %c0_i32_1 = arith.constant 0 : i32
    return %c0_i32, %c0_i32_0 : i32, i32
  }
  func.func @transform_5(%arg0: i32, %arg1: i32, %arg2: i32) -> (i32, i32, i32) {
    %c0_i32 = arith.constant 0 : i32
    %c0_i32_0 = arith.constant 0 : i32
    %c0_i32_1 = arith.constant 0 : i32
    %c0_i32_2 = arith.constant 0 : i32
    return %c0_i32, %c0_i32_0, %c0_i32_1 : i32, i32, i32
  }
  func.func @transform_6(%arg0: i32, %arg1: i32, %arg2: i32) -> (i32, i32) {
    %c0_i32 = arith.constant 0 : i32
    %c0_i32_0 = arith.constant 0 : i32
    %c0_i32_1 = arith.constant 0 : i32
    return %c0_i32, %c0_i32_0 : i32, i32
  }
  func.func @transform_7(%arg0: i32, %arg1: i32, %arg2: i32) -> (i32, i32, i32) {
    %c0_i32 = arith.constant 0 : i32
    return %arg0, %arg1, %arg2 : i32, i32, i32
  }
  func.func @transform_8(%arg0: i32, %arg1: i32, %arg2: i32) -> (i32, i32, i32) {
    %c0_i32 = arith.constant 0 : i32
    %c0_i32_0 = arith.constant 0 : i32
    return %arg0, %arg1, %c0_i32 : i32, i32, i32
  }
}

</mosaic_0001>

<bundles_post_ra>
// kernel: tpu_custom_call.1
= control target key start
LH: loop header
LB: loop body
LE: loop exit
PB: predicated region body
PF: predicated region fallthrough
CT: control target
= control target key end

     0   :  { %s2052_s0 = inlined_call_operand.vmem [shape: s32[2,16,1], index: 0, kind: input, shape index: {}]   ;;  %s2053_s1 = inlined_call_operand.hbm [shape: f32[2,16,16,16], index: 1, kind: input, shape index: {}]   ;;  %s2054_s2 = inlined_call_operand.vmem [shape: f32[2,16,32], index: 2, kind: input, shape index: {}]   ;;  %s2055_s3 = inlined_call_operand.hbm [shape: f32[2,16,1024], index: 3, kind: input, shape index: {}]   ;;  %s2056_s4 = inlined_call_operand.vmem [shape: f32[1,32], index: 4, kind: input, shape index: {}]   ;;  %s2057_s5 = inlined_call_operand.vmem [shape: f32[1,16,1], index: 5, kind: input, shape index: {}]   ;;  %s2058_s6 = inlined_call_operand.vmem [shape: f32[1,2], index: 6, kind: input, shape index: {}]   ;;  %s2059_s7 = inlined_call_operand.hbm [shape: f32[2,16,1024], index: 7, kind: output, shape index: {0}]   ;;  %s2060_s8 = inlined_call_operand.vmem [shape: f32[2,16,1], index: 8, kind: output, shape index: {1}]  }
   0x1   :  { %2083 = sst [smem:[#allocation30_spill]] %s2052_s0 }
   0x2   :  { %2084 = sst [smem:[#allocation31_spill]] %s2053_s1 }
   0x3   :  { %2085 = sst [smem:[#allocation32_spill]] %s2054_s2 }
   0x4   :  { %2086 = sst [smem:[#allocation33_spill]] %s2055_s3 }
   0x5   :  { %2087 = sst [smem:[#allocation34_spill]] %s2056_s4 }
   0x6   :  { %2088 = sst [smem:[#allocation35_spill]] %s2057_s5 }
   0x7   :  { %2089 = sst [smem:[#allocation36_spill]] %s2058_s6 }
   0x8   :  { %2090 = sst [smem:[#allocation37_spill]] %s2059_s7 }
   0x9   :  { %2091 = sst [smem:[#allocation38_spill]] %s2060_s8 }
   0xa   :  { %14 = vsyncpa [#allocation5], 0 }
   0xb   :  { %16 = vsyncpa [#allocation5 + $0x1], 0 }
   0xc   :  { %17 = vsyncpa [#allocation9], 0 }
   0xd   :  { %19 = vsyncpa [#allocation9 + $0x1], 0 }
   0xe   :  { %20 = vsyncpa [#allocation7], 0 }
   0xf   :  { %21 = vsyncpa [#allocation6], 0 }
  0x10   :  { %23 = vsyncpa [#allocation6 + $0x1], 0  ;;  %s1677_s27 = smov 0   ;;  %s1679_s28 = smov 0  }
  0x11   :  { %s1681_s29 = smov 0   ;;  %s1683_s30 = smov 0  }
  0x12   :  { %s1685_s9 = smov 0   ;;  %s1687_s10 = smov 0  }
  0x13   :  { %s1689_s11 = smov 0   ;;  %s1691_s12 = smov 0  }
  0x14   :  { %s1693_s13 = smov 0   ;;  %s1695_s14 = smov 0  }
  0x15   :  { %s1697_s15 = smov 0   ;;  %s1699_s16 = smov 0  }
  0x16   :  { %s1701_s17 = smov 0  }
  0x17 LB: > { %2092 = sst [smem:[#allocation16_spill]] %s1572_s27  ;;  %s1160_s18 = sadd.s32 4294967295, %s1620_s17   ;;  %s1620_s17 = sphi %s1701_s17, %s29_s17   ;;  %s1616_s16 = sphi %s1699_s16, %s2148_s16   ;;  %s1612_s15 = sphi %s1697_s15, %s2156_s15   ;;  %s1608_s14 = sphi %s1695_s14, %s2155_s14   ;;  %s1604_s13 = sphi %s1693_s13, %s2145_s13   ;;  %s1600_s12 = sphi %s1691_s12, %s2154_s12   ;;  %s1596_s11 = sphi %s1689_s11, %s2144_s11   ;;  %s1592_s10 = sphi %s1687_s10, %s2153_s10   ;;  %s1588_s9 = sphi %s1685_s9, %s2152_s9   ;;  %s1584_s30 = sphi %s1683_s30, %s2151_s30   ;;  %s1580_s29 = sphi %s1681_s29, %s2150_s29   ;;  %s1576_s28 = sphi %s1679_s28, %s2149_s28   ;;  %s1572_s27 = sphi %s1677_s27, %s2143_s27  }
  0x18   : > { %2093 = sst [smem:[#allocation17_spill]] %s1576_s28  ;;  %p96_p0 = scmp.ne.s32.totalorder %s1588_s9, %s1584_s30 }
  0x19   : > { %2094 = sst [smem:[#allocation18_spill]] %s1596_s11  ;;  %p1742_p1 = scmp.eq.s32.totalorder %s1160_s18, 0 }
  0x1a   : > { %2095 = sst [smem:[#allocation19_spill]] %s1600_s12  ;;  %p1746_p2 = scmp.eq.s32.totalorder %s1160_s18, 7 }
  0x1b   : > { %2096 = sst [smem:[#allocation20_spill]] %s1604_s13  ;;  %p1162_p3 = scmp.ge.s32.totalorder %s1620_s17, 1 }
  0x1c   : > { %2097 = sst [smem:[#allocation21_spill]] %s1608_s14  ;;  %p286_p4 = scmp.lt.s32.totalorder %s1620_s17, 9 }
  0x1d   : > { %2098 = sst [smem:[#allocation22_spill]] %s1616_s16  ;;  %p1754_p5 = por %p1742_p1, %p96_p0 }
  0x1e   : > { %s2099_s19 = scalar_select %p1742_p1, 1, 0 }
  0x1f   : > { %s2102_s21 = scalar_select %p1754_p5, 1, 0 }
  0x20   : > { %2100 = sst [smem:[#allocation23_spill]] %s2099_s19  ;;  %p1758_p6 = pnand %p1162_p3, %p286_p4 }
  0x21   : > { %s2104_s6 = sld [smem:[#allocation36_spill]] }
  0x22   : > { %p1236_p7 = pneg %p1758_p6 }
  0x24   : > { %p1237_p8 = pnand %p1236_p7, %p1742_p1 }
  0x26   : > { %p1407_p10 = pneg %p1237_p8 }
  0x27   : > { %s305_s25 = sshll.u32 %s2104_s6, 4  ;;  %s306_s25 = int_to_ptr.vmem [resolvable:$true] %s305_s25 }
  0x28   : > { %s1405_s26 = scalar_lea.vmem %s306_s25, 16  ;;  %p1413_p13 = scmp.lt.s32.totalorder %s306_s25, %s306_s25 }
  0x29   : > { %p1406_p9 = scmp.ne.s32.totalorder %s306_s25, %s1405_s26  ;;  %p1414_p0 = scmp.lt.s32.totalorder %s1405_s26, %s1405_s26 }
  0x2b   : > { %p1408_p11 = pnand %p1407_p10, %p1406_p9  ;;  %p1415_p3 = por %p1414_p0, %p1413_p13 }
  0x2d   : > { %p1409_p12 = pneg %p1408_p11 }
  0x2f   : > { %p1416_p4 = pnand %p1415_p3, %p1409_p12 }
  0x31   : > { %1419 = shalt.err (!%p1416_p4)
}
  0x32   : > { %s1622_s30 = smov [#allocation10]   ;;  %p90_p7 = scmp.ne.s32.totalorder %s1592_s10, %s1588_s9 }
  0x33   : > { %1239 = dma.vmem_to_smem (!%p1237_p8), %s306_s25, 16, %s1622_s30, [#allocation7]  }
  0x34   : > { %p2064_p9 = scmp.eq.s32.totalorder %s1620_s17, 0  ;;  %p1252_p10 = scmp.lt.s32.totalorder %s1620_s17, 8 }
  0x35   : > { %s324_s23 = sand.u32 1, %s1592_s10   ;;  %s1224_s24 = sshll.u32 %s1612_s15, 4 }
  0x36   : > { %p92_p11 = por %p2064_p9, %p90_p7  ;;  %s1165_s26 = sshll.u32 %s324_s23, 7 }
  0x37   : > { %s1168_s6 = sshll.u32 %s1616_s16, 5  ;;  %s328_s5 = scalar_lea.vmem [#allocation4], %s1165_s26 }
  0x38   : > { %s335_s7 = sadd.s32 %s1224_s24, %s1168_s6  ;;  %s338_s11 = sshll.u32 %s328_s5, 4  ;;  %s339_s11 = int_to_ptr.vmem [resolvable:$true] %s338_s11 }
  0x39   : > { %s1169_s4 = sshll.u32 %s335_s7, 7  ;;  %s2105_s1 = sld [smem:[#allocation31_spill]] }
  0x3a   : > { %p1784_p8 = pnand %p1252_p10, %p92_p11  ;;  %s325_s30 = scalar_lea.sflag [#allocation5], %s324_s23 }
  0x3b   : > { %s1433_s18 = scalar_lea.vmem %s339_s11, 2048  ;;  %s1623_s6 = smov [#allocation4]  }
  0x3c   : > { %p1422_p12 = pneg %p1784_p8  ;;  %p1434_p13 = scmp.ne.s32.totalorder %s339_s11, %s1433_s18 }
  0x3d   : > { %s1438_s5 = sshll.u32 %s1623_s6, 4  ;;  %s1439_s5 = int_to_ptr.vmem [resolvable:$false] %s1438_s5 }
  0x3e   : > { %p1436_p0 = pnand %p1434_p13, %p1422_p12  ;;  %s1440_s7 = scalar_lea.vmem %s1439_s5, 4096 }
  0x3f   : > { %s337_s0 = scalar_lea.hbm %s2105_s1, %s1169_s4  ;;  %p1441_p4 = scmp.lt.s32.totalorder %s339_s11, %s1439_s5 }
  0x40   : > { %p1437_p3 = pneg %p1436_p0  ;;  %p1442_p7 = scmp.lt.s32.totalorder %s1440_s7, %s1433_s18 }
  0x42   : > { %p1443_p9 = por %p1442_p7, %p1441_p4 }
  0x44   : > { %p1444_p5 = pnand %p1443_p9, %p1437_p3 }
  0x46   : > { %1447 = shalt.err (!%p1444_p5)
}
  0x47   : > { %s1624_s2 = smov 128   ;;  %s1625_s4 = smov 8  }
  0x48   : > { %1243 = dma.hbm_to_vmem [thread:$0]  (!%p1784_p8), %s337_s0, 2048, %s339_s11, %s325_s30, %s1624_s2, %s1624_s2, %s1625_s4  }
  0x49   : > { %s1161_s8 = sadd.s32 4294967294, %s1620_s17   ;;  %s41_s18 = sadd.s32 1, %s1608_s14 }
  0x4a   : > { %p42_p5 = scmp.ge.s32.totalorder %s41_s18, 2  ;;  %s44_s23 = sadd.s32 1, %s1612_s15 }
  0x4b   : > { %s48_s24 = sadd.s32 1, %s1616_s16  ;;  %s141_s26 = sadd.s32 1, %s1580_s29 }
  0x4c   : > { %s2158_s18 = smov (%p42_p5, %s41_s18), 0  ;;  %s2160_s23 = smov (!%p42_p5, %s44_s23), %s1612_s15 }
  0x4d   : > { %2107 = sst [smem:[#allocation24_spill]] %s2158_s18  ;;  %s137_s6 = ssub.s32 %s1608_s14, %s2158_s18 }
  0x4e   : > { %p148_p9 = scmp.ne.s32.totalorder %s1580_s29, %s1576_s28  ;;  %p46_p11 = scmp.ge.s32.totalorder %s2160_s23, 2 }
  0x4f   : > { %p154_p8 = scmp.ne.s32.totalorder %s1576_s28, %s1572_s27  ;;  %p2108_p12 = scmp.eq.s32.totalorder %s1620_s17, 0 }
  0x50   : > { %p1814_p0 = por %p1746_p2, %p148_p9  ;;  %s2162_s23 = smov (%p46_p11, %s2160_s23), 0 }
  0x51   : > { %p1808_p13 = por %p148_p9, %p2108_p12  ;;  %2112 = sst [smem:[#allocation26_spill]] %s2162_s23 }
  0x52   : > { %s2110_s11 = scalar_select %p1814_p0, 1, 0 }
  0x53   : > { %s2164_s24 = smov (!%p46_p11, %s48_s24), %s1616_s16  ;;  %s79_s25 = ssub.s32 %s1612_s15, %s2162_s23 }
  0x54   : > { %2111 = sst [smem:[#allocation25_spill]] %s2110_s11  ;;  %p1825_p3 = por %p154_p8, %p1742_p1 }
  0x55   : > { %p50_p4 = scmp.ge.s32.totalorder %s2164_s24, 2  ;;  %p251_p2 = scmp.eq.s32.totalorder %s1161_s8, 7 }
  0x56   : > { %s2113_s30 = scalar_select %p1825_p3, 1, 0 }
  0x57   : > { %s359_s20 = sand.u32 1, %s1580_s29   ;;  %s1171_s5 = sshll.u32 %s1608_s14, 2 }
  0x58   : > { %2114 = sst [smem:[#allocation27_spill]] %s2113_s30  ;;  %s2166_s24 = smov (%p50_p4, %s2164_s24), 0 }
  0x59   : > { %2115 = sst [smem:[#allocation28_spill]] %s2166_s24  ;;  %p1833_p7 = por %p251_p2, %p154_p8 }
  0x5a   : > { %s78_s2 = ssub.s32 %s1616_s16, %s2166_s24  ;;  %s1170_s4 = sshll.u32 %s359_s20, 5 }
  0x5b   : > { %s2116_s7 = scalar_select %p1833_p7, 1, 0 }
  0x5c   : > { %s80_s1 = sor.u32 %s79_s25, %s78_s2  ;;  %s1172_s18 = sshll.u32 %s1612_s15, 3 }
  0x5d   : > { %2117 = sst [smem:[#allocation29_spill]] %s2116_s7  ;;  %p81_p5 = scmp.eq.s32.totalorder %s80_s1, 0 }
  0x5e   : > { %s138_s23 = sor.u32 %s137_s6, %s80_s1  ;;  %s2118_s27 = sadd.s32 1, %s1592_s10 }
  0x5f   : > { %p139_p9 = scmp.eq.s32.totalorder %s138_s23, 0  ;;  %s369_s11 = sadd.s32 %s1172_s18, %s1171_s5 }
  0x60   : > { %s1843_s8 = scalar_select %p81_p5, %s1592_s10, %s2118_s27  }
  0x61   : > { %s1846_s14 = scalar_select %p139_p9, %s1580_s29, %s141_s26  }
  0x62   : > { %s1173_s12 = sshll.u32 %s1616_s16, 4  ;;  %s363_s19 = scalar_lea.vmem [#allocation8], %s1170_s4 }
  0x63   : > { %s371_s13 = sadd.s32 %s1173_s12, %s369_s11  ;;  %s375_s30 = sshll.u32 %s363_s19, 4  ;;  %s376_s30 = int_to_ptr.vmem [resolvable:$true] %s375_s30 }
  0x64   : > { %s1174_s7 = sshll.u32 %s371_s13, 7  ;;  %s2119_s3 = sld [smem:[#allocation33_spill]] }
  0x65   : > { %p1856_p11 = pnand %p1252_p10, %p1808_p13  ;;  %s360_s27 = scalar_lea.sflag [#allocation9], %s359_s20 }
  0x66   : > { %s1461_s18 = scalar_lea.vmem %s376_s30, 512  ;;  %s1626_s12 = smov [#allocation8]  }
  0x67   : > { %p1450_p8 = pneg %p1856_p11  ;;  %p1462_p12 = scmp.ne.s32.totalorder %s376_s30, %s1461_s18 }
  0x68   : > { %s1466_s13 = sshll.u32 %s1626_s12, 4  ;;  %s1467_s13 = int_to_ptr.vmem [resolvable:$false] %s1466_s13 }
  0x69   : > { %p1464_p4 = pnand %p1462_p12, %p1450_p8  ;;  %s1468_s19 = scalar_lea.vmem %s1467_s13, 1024 }
  0x6a   : > { %s373_s25 = scalar_lea.hbm %s2119_s3, %s1174_s7  ;;  %p1469_p5 = scmp.lt.s32.totalorder %s376_s30, %s1467_s13 }
  0x6b   : > { %p1465_p2 = pneg %p1464_p4  ;;  %p1470_p9 = scmp.lt.s32.totalorder %s1468_s19, %s1461_s18 }
  0x6d   : > { %p1471_p7 = por %p1470_p9, %p1469_p5 }
  0x6f   : > { %p1472_p0 = pnand %p1471_p7, %p1465_p2 }
  0x71   : > { %1475 = shalt.err (!%p1472_p0)
}
  0x72   : > { %1246 = dma.hbm_to_vmem [thread:$0]  (!%p1856_p11), %s373_s25, 512, %s376_s30, %s360_s27  }
  0x73   : > { %384 = sbr.rel (%p1758_p6) target bundleno = 691 (0x2b3), region = 48  ;;  %s386_s28 = sand.u32 (!%p1758_p6), 1, %s1588_s9  }
  0x74   : > { %s1176_s23 = sshll.u32 (!%p1758_p6), %s386_s28, 7  ;;  %s387_s24 = scalar_lea.sflag (!%p1758_p6), [#allocation5], %s386_s28 }
  0x75   : > { %s1867_s26 = scalar_lea.vmem (!%p1758_p6), [#allocation4], %s1176_s23  ;;  %p2121_p10 = scmp.ne.s32.totalorder (!%p1758_p6), %s2102_s21, 0 }
  0x78   : > { %1555 = dma.done.wait (%p2121_p10), %s387_s24, 2048  }
  0x79   : > { %1557 = vsyncadd (%p2121_p10), %s387_s24, 4294965248  ;;  %s2122_s6 = sld [smem:[#allocation17_spill]] }
  0x7f   : > { %s1874_s11 = sand.u32 1, %s2122_s6  }
  0x80   : > { %s1177_s22 = sshll.u32 %s1874_s11, 5  ;;  %s396_s30 = scalar_lea.sflag [#allocation9], %s1874_s11 }
  0x81   : > { %s1878_s20 = scalar_lea.vmem [#allocation8], %s1177_s22 }
  0x82   : > { %1559 = dma.done.wait (%p1825_p3), %s396_s30, 512  }
  0x83   : > { %1561 = vsyncadd (%p1825_p3), %s396_s30, 4294966784 }
  0x84   : > { %1563 = dma.done.wait (%p1742_p1), [#allocation7], 16  }
  0x85   : > { %1565 = vsyncadd (%p1742_p1), [#allocation7], 4294967280 }
  0x86   : > { %408 = sfence }
  0x87   : > { %s2125_s21 = sld [smem:[#allocation20_spill]]  ;;  %s1905_s3 = scalar_lea.vmem [#allocation11], %s1177_s22 }
  0x88   : > { %s2126_s7 = sld [smem:[#allocation19_spill]] }
  0x89   : > { %s2127_s27 = sld [smem:[#allocation30_spill]] }
  0x8a   : > { %s2128_s23 = sld [smem:[#allocation32_spill]] }
  0x8b   : > { %s2129_s30 = sld [smem:[#allocation38_spill]] }
  0x8c   : > { %s2130_s16 = sld [smem:[#allocation18_spill]] }
  0x8d   : > { %p463_p6 = scmp.lt.s32.totalorder %s2125_s21, 1 }
  0x8e   : > { %p471_p13 = scmp.lt.s32.totalorder %s2126_s7, 1 }
  0x8f   : > { %s2168_s21 = smov (!%p463_p6, %s2125_s21), 1 }
  0x90   : > { %s2170_s7 = smov (!%p471_p13, %s2126_s7), 1  ;;  %s1225_s2 = sshll.u32 %s2168_s21, 4 }
  0x91   : > { %s1182_s4 = sshll.u32 %s2168_s21, 1  ;;  %s1895_s18 = scalar_lea.vmem %s2127_s27, %s1225_s2 }
  0x92   : > { %s474_s12 = sadd.s32 %s1182_s4, %s2170_s7  ;;  %p1186_p1 = scmp.ne.s32.totalorder %s2130_s16, 0 }
  0x93   : > { %s1183_s13 = sshll.u32 %s474_s12, 3  ;;  %s2131_s2 = sld [smem:[#allocation35_spill]] (!%p1186_p1) }
  0x94   : > { %s476_s24 = scalar_lea.vmem %s2128_s23, %s1183_s13  ;;  %s1903_s5 = scalar_lea.vmem %s2129_s30, %s1183_s13 }
  0x95   : > { %490 = sbr.rel (%p1186_p1) target bundleno = 348 (0x15c), region = 64  ;;  %s2132_s1 = sld [smem:[#allocation34_spill]] (!%p1186_p1) }
  0x96   : > { %s1187_s27 = sld [smem:[#allocation10 + $0x1]] (!%p1186_p1) }
  0x97   : > { %s1917_s12 = sld [smem:[#allocation10]] (!%p1186_p1) }
  0x9a   : > { %v530_v0 = vld [vmem:[%s2131_s2] sm:$0xff]  ;;  %v1627_v2 = vmov 0   ;;  %vm518_vm0 = vcmask 261120   ;;  %v531_v5 = vld [vmem:[%s2131_s2 + $0x8] sm:$0xff]  ;;  %v492_v7 = vld [vmem:[%s1867_s26] sm:$0xff]  ;;  %vm558_vm1 = vcmask 130048  }
  0x9b   : > { %v491_v1 = vld [vmem:[%s476_s24] sm:$0xff]  ;;  %1366 = vset.pattern.permute.xlu0 %v1627_v2  ;;  %v496_v9 = vld [vmem:[%s1867_s26 + $0x20] sm:$0xff]  ;;  %v493_v22 = vld [vmem:[%s1867_s26 + $0x8] sm:$0xff]  ;;  %vm699_vm2 = vcmask 1041409   ;;  %vm701_vm3 = vcmask 1042434   ;;  %vm703_vm4 = vcmask 1043459  }
  0x9c   : > { %v1188_v3 = vld [vmem:[%s2132_s1] ss:$0 sm:$0xff]  ;;  %534 = vperm.xlu0 %1366, %v530_v0   ;;  %v500_v11 = vld [vmem:[%s1867_s26 + $0x40] sm:$0xff]  ;;  %v1927_v16 = vstv %s1187_s27  ;;  %v495_v23 = vld [vmem:[%s1867_s26 + $0x18] sm:$0xff]  ;;  %vm705_vm5 = vcmask 1044484   ;;  %vm707_vm6 = vcmask 1045509  }
  0x9d   : > { %v517_v4 = vmul.f32 %v1188_v3, %v491_v1  ;;  %v494_v8 = vld [vmem:[%s1867_s26 + $0x10] sm:$0xff]  ;;  %v504_v13 = vld [vmem:[%s1867_s26 + $0x60] sm:$0xff]  ;;  %v522_v17 = vstv %s1917_s12  ;;  %v497_v24 = vld [vmem:[%s1867_s26 + $0x28] sm:$0xff]  ;;  %vm709_vm7 = vcmask 1046534   ;;  %vm711_vm8 = vcmask 1047559  }
  0x9e   : > { %v498_v10 = vld [vmem:[%s1867_s26 + $0x30] sm:$0xff]  ;;  %v499_v29 = vld [vmem:[%s1867_s26 + $0x38] sm:$0xff]  ;;  %v501_v30 = vld [vmem:[%s1867_s26 + $0x48] sm:$0xff]  ;;  %vm688_vm9 = vcmask 7168  }
  0x9f   : > { %v519_v6 = vsel %vm518_vm0, %v517_v4, 0.0  ;;  %v502_v12 = vld [vmem:[%s1867_s26 + $0x50] sm:$0xff]  ;;  %v503_v31 = vld [vmem:[%s1867_s26 + $0x58] sm:$0xff]  ;;  %v505_v32 = vld [vmem:[%s1867_s26 + $0x68] sm:$0xff] }
  0xa0   : > { %520 = vadd.xlane.f32.xlu1 %v519_v6  ;;  %539 = vperm.xlu0 %1366, %v531_v5   ;;  %v506_v14 = vld [vmem:[%s1867_s26 + $0x70] sm:$0xff]  ;;  %v507_v33 = vld [vmem:[%s1867_s26 + $0x78] sm:$0xff] }
 0x117   : > { %v535_v15 = vpop.permute.xlu0 %534 }
 0x118   : > { %v542_v18 = vmul.f32 %v535_v15, %v492_v7  ;;  %v544_v19 = vmul.f32 %v535_v15, %v494_v8  ;;  %v546_v20 = vmul.f32 %v535_v15, %v496_v9  ;;  %v548_v21 = vmul.f32 %v535_v15, %v498_v10 }
 0x119   : > { %v550_v25 = vmul.f32 %v535_v15, %v500_v11  ;;  %v552_v26 = vmul.f32 %v535_v15, %v502_v12  ;;  %v554_v27 = vmul.f32 %v535_v15, %v504_v13  ;;  %v556_v28 = vmul.f32 %v535_v15, %v506_v14 }
 0x11a   : > { %v559_v34 = vsel %vm558_vm1, %v542_v18, 0.0  ;;  %v568_v35 = vsel %vm558_vm1, %v544_v19, 0.0  ;;  %v577_v36 = vsel %vm558_vm1, %v546_v20, 0.0  ;;  %v586_v37 = vsel %vm558_vm1, %v548_v21, 0.0 }
 0x11b   : > { %v540_v38 = vpop.permute.xlu0 %539  ;;  %v595_v39 = vsel %vm558_vm1, %v550_v25, 0.0  ;;  %v604_v40 = vsel %vm558_vm1, %v552_v26, 0.0  ;;  %v613_v41 = vsel %vm558_vm1, %v554_v27, 0.0  ;;  %v622_v42 = vsel %vm558_vm1, %v556_v28, 0.0 }
 0x11c   : > { %v543_v43 = vmul.f32 %v540_v38, %v493_v22  ;;  %v545_v44 = vmul.f32 %v540_v38, %v495_v23  ;;  %v547_v45 = vmul.f32 %v540_v38, %v497_v24  ;;  %v549_v46 = vmul.f32 %v540_v38, %v499_v29 }
 0x11d   : > { %v551_v47 = vmul.f32 %v540_v38, %v501_v30  ;;  %v553_v48 = vmul.f32 %v540_v38, %v503_v31  ;;  %v555_v49 = vmul.f32 %v540_v38, %v505_v32  ;;  %v557_v50 = vmul.f32 %v540_v38, %v507_v33 }
 0x11e   : > { %v560_v51 = vsel %vm558_vm1, %v543_v43, 0.0  ;;  %v569_v52 = vsel %vm558_vm1, %v545_v44, 0.0  ;;  %v578_v53 = vsel %vm558_vm1, %v547_v45, 0.0  ;;  %v587_v54 = vsel %vm558_vm1, %v549_v46, 0.0 }
 0x11f   : > { %v561_v55 = vadd.f32 %v560_v51, %v559_v34  ;;  %v570_v56 = vadd.f32 %v569_v52, %v568_v35  ;;  %v579_v57 = vadd.f32 %v578_v53, %v577_v36  ;;  %v588_v58 = vadd.f32 %v587_v54, %v586_v37 }
 0x120   : > { %v596_v59 = vsel %vm558_vm1, %v551_v47, 0.0  ;;  %v605_v60 = vsel %vm558_vm1, %v553_v48, 0.0  ;;  %v614_v61 = vsel %vm558_vm1, %v555_v49, 0.0  ;;  %v623_v62 = vsel %vm558_vm1, %v557_v50, 0.0 }
 0x121   : > { %v562_v63 = vrot.slane %v561_v55, 4  ;;  %v571_v0 = vrot.slane %v570_v56, 4  ;;  %v580_v1 = vrot.slane %v579_v57, 4  ;;  %v589_v2 = vrot.slane %v588_v58, 4 }
 0x122   : > { %v597_v3 = vadd.f32 %v596_v59, %v595_v39  ;;  %v606_v4 = vadd.f32 %v605_v60, %v604_v40  ;;  %v615_v5 = vadd.f32 %v614_v61, %v613_v41  ;;  %v624_v6 = vadd.f32 %v623_v62, %v622_v42 }
 0x123   : > { %v563_v7 = vadd.f32 %v562_v63, %v561_v55  ;;  %v572_v8 = vadd.f32 %v571_v0, %v570_v56  ;;  %v581_v9 = vadd.f32 %v580_v1, %v579_v57  ;;  %v590_v10 = vadd.f32 %v589_v2, %v588_v58 }
 0x124   : > { %v598_v11 = vrot.slane %v597_v3, 4  ;;  %v607_v12 = vrot.slane %v606_v4, 4  ;;  %v616_v13 = vrot.slane %v615_v5, 4  ;;  %v625_v14 = vrot.slane %v624_v6, 4 }
 0x125   : > { %v564_v15 = vrot.slane %v563_v7, 2  ;;  %v573_v18 = vrot.slane %v572_v8, 2  ;;  %v582_v19 = vrot.slane %v581_v9, 2  ;;  %v591_v20 = vrot.slane %v590_v10, 2 }
 0x126   : > { %v599_v21 = vadd.f32 %v598_v11, %v597_v3  ;;  %v608_v22 = vadd.f32 %v607_v12, %v606_v4  ;;  %v617_v23 = vadd.f32 %v616_v13, %v615_v5  ;;  %v626_v24 = vadd.f32 %v625_v14, %v624_v6 }
 0x127   : > { %v565_v25 = vadd.f32 %v564_v15, %v563_v7  ;;  %v574_v26 = vadd.f32 %v573_v18, %v572_v8  ;;  %v583_v27 = vadd.f32 %v582_v19, %v581_v9  ;;  %v592_v28 = vadd.f32 %v591_v20, %v590_v10 }
 0x128   : > { %v600_v29 = vrot.slane %v599_v21, 2  ;;  %v609_v30 = vrot.slane %v608_v22, 2  ;;  %v618_v31 = vrot.slane %v617_v23, 2  ;;  %v627_v32 = vrot.slane %v626_v24, 2 }
 0x129   : > { %v566_v33 = vrot.slane %v565_v25, 1  ;;  %v575_v34 = vrot.slane %v574_v26, 1  ;;  %v584_v35 = vrot.slane %v583_v27, 1  ;;  %v593_v36 = vrot.slane %v592_v28, 1  ;;  %v521_v57 = vpop.xlane.xlu1 %520 }
 0x12a   : > { %v601_v37 = vadd.f32 %v600_v29, %v599_v21  ;;  %v610_v38 = vadd.f32 %v609_v30, %v608_v22  ;;  %v619_v39 = vadd.f32 %v618_v31, %v617_v23  ;;  %v628_v40 = vadd.f32 %v627_v32, %v626_v24 }
 0x12b   : > { %v567_v41 = vadd.f32 %v566_v33, %v565_v25  ;;  %v576_v42 = vadd.f32 %v575_v34, %v574_v26  ;;  %v585_v43 = vadd.f32 %v584_v35, %v583_v27  ;;  %v594_v44 = vadd.f32 %v593_v36, %v592_v28 }
 0x12c   : > { %v602_v45 = vrot.slane %v601_v37, 1  ;;  %v611_v46 = vrot.slane %v610_v38, 1  ;;  %v620_v47 = vrot.slane %v619_v39, 1  ;;  %v629_v48 = vrot.slane %v628_v40, 1 }
 0x12d   : > { %v632_v49 = vadd.f32 %v1927_v16, %v567_v41  ;;  %v633_v50 = vadd.f32 %v1927_v16, %v576_v42  ;;  %v634_v51 = vadd.f32 %v1927_v16, %v585_v43  ;;  %v635_v52 = vadd.f32 %v1927_v16, %v594_v44 }
 0x12e   : > { %v603_v53 = vadd.f32 %v602_v45, %v601_v37  ;;  %v612_v54 = vadd.f32 %v611_v46, %v610_v38  ;;  %v621_v55 = vadd.f32 %v620_v47, %v619_v39  ;;  %v630_v56 = vadd.f32 %v629_v48, %v628_v40 }
 0x12f   : > { %v1190_v58 = vmul.f32 -1.442695, %v632_v49  ;;  %v1191_v59 = vmul.f32 -1.442695, %v633_v50  ;;  %v1192_v60 = vmul.f32 -1.442695, %v634_v51  ;;  %v523_v2 = vadd.f32 %v522_v17, %v521_v57 }
 0x130   : > { %v636_v61 = vadd.f32 %v1927_v16, %v603_v53  ;;  %v637_v62 = vadd.f32 %v1927_v16, %v612_v54  ;;  %v638_v63 = vadd.f32 %v1927_v16, %v621_v55  ;;  %v639_v0 = vadd.f32 %v1927_v16, %v630_v56 }
 0x131   : > { %1367 = vpow2.f32 %v1190_v58  ;;  %v1193_v1 = vmul.f32 -1.442695, %v635_v52  ;;  %v1189_v7 = vmul.f32 -1.442695, %v523_v2 }
 0x132   : > { %1369 = vpow2.f32 %v1191_v59  ;;  %v1194_v3 = vmul.f32 -1.442695, %v636_v61  ;;  %v1195_v4 = vmul.f32 -1.442695, %v637_v62  ;;  %v1196_v5 = vmul.f32 -1.442695, %v638_v63 }
 0x133   : > { %1371 = vpow2.f32 %v1192_v60  ;;  %v1197_v6 = vmul.f32 -1.442695, %v639_v0 }
 0x134   : > { %1373 = vpow2.f32 %v1193_v1 }
 0x135   : > { %1375 = vpow2.f32 %v1194_v3 }
 0x136   : > { %1377 = vpow2.f32 %v1195_v4 }
 0x137   : > { %1379 = vpow2.f32 %v1196_v5 }
 0x138   : > { %1381 = vpow2.f32 %v1197_v6 }
 0x139   : > { %1383 = vpow2.f32 %v1189_v7 }
 0x13e   : > { %v1368_v8 = vpop.eup %1367 }
 0x13f   : > { %v1370_v9 = vpop.eup %1369  ;;  %v664_v16 = vadd.f32 1.0, %v1368_v8 }
 0x140   : > { %v1372_v10 = vpop.eup %1371  ;;  %v665_v11 = vadd.f32 1.0, %v1370_v9 }
 0x141   : > { %v1374_v12 = vpop.eup %1373  ;;  %v666_v17 = vadd.f32 1.0, %v1372_v10  ;;  %1385 = vrcp.f32 %v664_v16 }
 0x142   : > { %v1376_v13 = vpop.eup %1375  ;;  %v667_v14 = vadd.f32 1.0, %v1374_v12  ;;  %1387 = vrcp.f32 %v665_v11 }
 0x143   : > { %v1378_v15 = vpop.eup %1377  ;;  %v668_v18 = vadd.f32 1.0, %v1376_v13  ;;  %1389 = vrcp.f32 %v666_v17 }
 0x144   : > { %v1380_v19 = vpop.eup %1379  ;;  %v669_v20 = vadd.f32 1.0, %v1378_v15  ;;  %1391 = vrcp.f32 %v667_v14 }
 0x145   : > { %v1382_v21 = vpop.eup %1381  ;;  %v670_v22 = vadd.f32 1.0, %v1380_v19  ;;  %1393 = vrcp.f32 %v668_v18 }
 0x146   : > { %v1384_v23 = vpop.eup %1383  ;;  %v671_v24 = vadd.f32 1.0, %v1382_v21  ;;  %1395 = vrcp.f32 %v669_v20 }
 0x147   : > { %1397 = vrcp.f32 %v670_v22  ;;  %v527_v25 = vadd.f32 1.0, %v1384_v23 }
 0x148   : > { %1399 = vrcp.f32 %v671_v24 }
 0x149   : > { %1401 = vrcp.f32 %v527_v25 }
 0x14e   : > { %v1386_v26 = vpop.eup %1385 }
 0x14f   : > { %v1388_v27 = vpop.eup %1387 }
 0x150   : > { %v1390_v28 = vpop.eup %1389  ;;  %v700_v29 = vsel %vm699_vm2, %v1388_v27, %v1386_v26 }
 0x151   : > { %v1392_v30 = vpop.eup %1391  ;;  %v702_v31 = vsel %vm701_vm3, %v1390_v28, %v700_v29 }
 0x152   : > { %v1394_v32 = vpop.eup %1393  ;;  %v704_v33 = vsel %vm703_vm4, %v1392_v30, %v702_v31 }
 0x153   : > { %v1396_v34 = vpop.eup %1395  ;;  %v706_v35 = vsel %vm705_vm5, %v1394_v32, %v704_v33 }
 0x154   : > { %v1398_v36 = vpop.eup %1397  ;;  %v708_v37 = vsel %vm707_vm6, %v1396_v34, %v706_v35 }
 0x155   : > { %v1400_v38 = vpop.eup %1399  ;;  %v710_v39 = vsel %vm709_vm7, %v1398_v36, %v708_v37 }
 0x156   : > { %v1402_v40 = vpop.eup %1401  ;;  %v712_v41 = vsel %vm711_vm8, %v1400_v38, %v710_v39 }
 0x157   : > { %689 = vst.msk [vmem:[#allocation3] sm:$0xff] %vm688_vm9, %v1402_v40  ;;  %v690_v42 = vsub.f32 1.0, %v1402_v40  ;;  %716 = vst.msk [vmem:[%s1903_s5] sm:$0xff] %vm688_vm9, %v1402_v40 }
 0x159   : > { %v714_v43 = vmul.f32 %v712_v41, %v690_v42 }
 0x15b   : > { %715 = vst.msk [vmem:[#allocation2] sm:$0xff] %vm558_vm1, %v714_v43 }
 0x15c PF: > { %s2133_s26 = sld [smem:[#allocation18_spill]]  ;;  %v718_v44 = vld [vmem:[%s1895_s18 + $0x8] sm:$0xff]  ;;  %v1628_v45 = vmov 0   ;;  %v717_v46 = vld [vmem:[%s1895_s18] sm:$0xff]  ;;  %v1629_v47 = vmov 0.0   ;;  %v719_v49 = vlaneseq  ;;  %v1630_v60 = vmov 1.0  }
 0x15d   : > { %1403 = vset.pattern.permute.xlu0 %v1628_v45  ;;  %1404 = vset.pattern.permute.xlu1 %v1628_v45  ;;  %s2134_s18 = sld [smem:[#allocation19_spill]]  ;;  %vm761_vm14 = vcmask 130048   ;;  %v907_v0 = vld [vmem:[%s1878_s20] sm:$0xff]  ;;  %v909_v1 = vld [vmem:[%s1878_s20 + $0x10] sm:$0xff]  ;;  %v908_v2 = vld [vmem:[%s1878_s20 + $0x8] sm:$0xff]  ;;  %s956_s5 = sshll.u32 %s1905_s3, 4  ;;  %s957_s5 = int_to_ptr.vmem [resolvable:$true] %s956_s5 }
 0x15e   : > { %734 = vperm.xlu0 %1403, %v718_v44   ;;  %829 = vmatprep.mubr.f32.mxu0 %v1629_v47  ;;  %v911_v48 = vld [vmem:[#allocation3] sm:$0xff]  ;;  %v720_v50 = vand.u32 127, %v719_v49  ;;  %s2135_s19 = sld [smem:[#allocation20_spill]]  ;;  %s930_s1 = scalar_lea.sflag [#allocation6], %s1874_s11 }
 0x15f   : > { %900 = vmatprep.mubr.f32.mxu1 %v1629_v47  ;;  %914 = vperm.xlu1 %1404, %v911_v48   ;;  %v910_v3 = vld [vmem:[%s1878_s20 + $0x18] sm:$0xff]  ;;  %s2136_s21 = sld [smem:[#allocation25_spill]]  ;;  %s1476_s16 = scalar_lea.vmem %s957_s5, 512 }
 0x160   : > { %v721_v51 = vadd.s32 128, %v720_v50  ;;  %v723_v52 = vadd.s32 384, %v720_v50  ;;  %v722_v53 = vadd.s32 256, %v720_v50  ;;  %s2137_s7 = sld [smem:[#allocation37_spill]]  ;;  %p1477_p0 = scmp.ne.s32.totalorder %s957_s5, %s1476_s16 }
 0x161   : > { %s1631_s22 = smov [#allocation11]  }
 0x162   : > { %731 = vperm.xlu0 %1403, %v717_v46   ;;  %s1198_s13 = sshll.u32 %s2133_s26, 9  ;;  %v760_v62 = vld [vmem:[#allocation2] sm:$0xff]  ;;  %s1218_s28 = sshll.u32 %s2133_s26, 2 }
 0x163   : > { %v725_v54 = vstv %s1198_s13  ;;  %s1219_s23 = sshll.u32 %s2134_s18, 3  ;;  %s1480_s27 = sshll.u32 %s1631_s22, 4  ;;  %s1481_s27 = int_to_ptr.vmem [resolvable:$false] %s1480_s27 }
 0x164   : > { %v727_v55 = vadd.s32 %v725_v54, %v721_v51  ;;  %v729_v56 = vadd.s32 %v725_v54, %v723_v52  ;;  %v726_v57 = vadd.s32 %v725_v54, %v720_v50  ;;  %v728_v58 = vadd.s32 %v725_v54, %v722_v53  ;;  %s950_s24 = sadd.s32 %s1219_s23, %s1218_s28  ;;  %s1220_s6 = sshll.u32 %s2135_s19, 4 }
 0x165   : > { %s952_s0 = sadd.s32 %s1220_s6, %s950_s24  ;;  %p2138_p3 = scmp.ne.s32.totalorder %s2136_s21, 0 }
 0x166   : > { %s1221_s30 = sshll.u32 %s952_s0, 7  ;;  %s1482_s12 = scalar_lea.vmem %s1481_s27, 1024 }
 0x167   : > { %s1982_s4 = scalar_lea.hbm %s2137_s7, %s1221_s30  ;;  %p1478_p7 = pnand %p1477_p0, %p2138_p3 }
 0x168   : > { %p1483_p8 = scmp.lt.s32.totalorder %s957_s5, %s1481_s27  ;;  %p1484_p12 = scmp.lt.s32.totalorder %s1482_s12, %s1476_s16 }
 0x169   : > { %p1479_p11 = pneg %p1478_p7 }
 0x16a   : > { %p1485_p4 = por %p1484_p12, %p1483_p8 }
 0x16c   : > { %p1486_p2 = pnand %p1485_p4, %p1479_p11 }
 0x1d9   : > { %v735_v59 = vpop.permute.xlu0 %734 }
 0x1da   : > { %vm741_vm10 = vcmp.eq.s32.totalorder %v735_v59, %v727_v55  ;;  %vm743_vm11 = vcmp.eq.s32.totalorder %v735_v59, %v729_v56  ;;  %vm740_vm12 = vcmp.eq.s32.totalorder %v735_v59, %v726_v57  ;;  %vm742_vm13 = vcmp.eq.s32.totalorder %v735_v59, %v728_v58  ;;  %v915_v63 = vpop.permute.xlu1 %914 }
 0x1db   : > { %1207 = vmatprep.subr.msk.mxu0 %vm741_vm10, %v1630_v60  ;;  %1212 = vmatprep.subr.msk.mxu1 %vm743_vm11, %v1630_v60  ;;  %v917_v4 = vmul.f32 %v915_v63, %v907_v0  ;;  %v919_v5 = vmul.f32 %v915_v63, %v909_v1  ;;  %v918_v6 = vmul.f32 %v915_v63, %v908_v2 }
 0x1dc   : > { %1208 = vmatpush1.msk.msra.mxu0 %vm740_vm12, %v1630_v60  ;;  %1213 = vmatpush1.msk.msra.mxu1 %vm742_vm13, %v1630_v60  ;;  %v920_v7 = vmul.f32 %v915_v63, %v910_v3 }
 0x1dd   : > { %v732_v61 = vpop.permute.xlu0 %731 }
 0x1de   : > { %vm737_vm15 = vcmp.eq.s32.totalorder %v732_v61, %v727_v55  ;;  %vm739_vm0 = vcmp.eq.s32.totalorder %v732_v61, %v729_v56  ;;  %vm736_vm1 = vcmp.eq.s32.totalorder %v732_v61, %v726_v57  ;;  %vm738_vm2 = vcmp.eq.s32.totalorder %v732_v61, %v728_v58 }
 0x1df   : > { %1209 = vmatprep.subr.msk.mxu0 %vm737_vm15, %v1630_v60  ;;  %1214 = vmatprep.subr.msk.mxu1 %vm739_vm0, %v1630_v60 }
 0x1e0   : > { %1210 = vmatpush1.msk.msra.mxu0 %vm736_vm1, %v1630_v60  ;;  %1215 = vmatpush1.msk.msra.mxu1 %vm738_vm2, %v1630_v60 }
 0x1e1   : > { %1211 = vmatmul.mubr.msk.f32.vlgmr.msra.gmra.mxu0 %vm761_vm14, %v760_v62  ;;  %1216 = vmatmul.mubr.msk.f32.vlgmr.msra.gmra.mxu1 %vm761_vm14, %v760_v62 }
 0x2a1   : > { %v831_v8 = vpop.f32.mrf.mxu0  ;;  %v902_v9 = vpop.f32.mrf.mxu1 }
 0x2a2   : > { %v921_v16 = vadd.f32 %v917_v4, %v831_v8  ;;  %v923_v10 = vadd.f32 %v919_v5, %v902_v9 }
 0x2a3   : > { %v833_v11 = vpop.f32.mrf.mxu0  ;;  %v904_v12 = vpop.f32.mrf.mxu1 }
 0x2a4   : > { %925 = vst [vmem:[%s1905_s3] sm:$0xff] %v921_v16  ;;  %927 = vst [vmem:[%s1905_s3 + $0x10] sm:$0xff] %v923_v10  ;;  %v922_v17 = vadd.f32 %v918_v6, %v833_v11  ;;  %v924_v13 = vadd.f32 %v920_v7, %v904_v12 }
 0x2a6   : > { %926 = vst [vmem:[%s1905_s3 + $0x8] sm:$0xff] %v922_v17  ;;  %928 = vst [vmem:[%s1905_s3 + $0x18] sm:$0xff] %v924_v13 }
 0x2a7   : > { %1489 = shalt.err (!%p1486_p2)
}
 0x2a8   : > { %s1490_s3 = scalar_lea.hbm %s1982_s4, 512  ;;  %s1494_s13 = scalar_lea.hbm %s2137_s7, 4096 }
 0x2a9   : > { %p1491_p5 = scmp.ne.s32.totalorder %s1982_s4, %s1490_s3  ;;  %p1495_p6 = scmp.lt.s32.totalorder %s1982_s4, %s2137_s7 }
 0x2aa   : > { %p1496_p13 = scmp.lt.s32.totalorder %s1494_s13, %s1490_s3 }
 0x2ab   : > { %p1492_p9 = pnand %p1491_p5, %p2138_p3 }
 0x2ac   : > { %p1497_p1 = por %p1496_p13, %p1495_p6 }
 0x2ad   : > { %p1493_p10 = pneg %p1492_p9 }
 0x2af   : > { %p1498_p0 = pnand %p1497_p1, %p1493_p10 }
 0x2b1   : > { %1501 = shalt.err (!%p1498_p0)
}
 0x2b2   : > { %1234 = dma.vmem_to_hbm [thread:$0]  (%p2138_p3), %s957_s5, 512, %s1982_s4, %s930_s1  }
 0x2b3 PF: > { %s2139_s28 = sld [smem:[#allocation16_spill]]  ;;  %p1254_p7 = scmp.ge.s32.totalorder %s1620_s17, 2 }
 0x2b4   : > { %s2140_s23 = sld [smem:[#allocation29_spill]] }
 0x2b9   : > { %s971_s24 = sand.u32 1, %s2139_s28  }
 0x2ba   : > { %p2141_p11 = scmp.ne.s32.totalorder %s2140_s23, 0  ;;  %s972_s6 = scalar_lea.sflag [#allocation6], %s971_s24 }
 0x2bc   : > { %p1248_p8 = pnand %p1254_p7, %p2141_p11 }
 0x2be   : > { %p1249_p12 = pneg %p1248_p8 }
 0x2c0   : > { %1567 = dma.done.wait (%p1249_p12), %s972_s6, 512  }
 0x2c1   : > { %1569 = vsyncadd (%p1249_p12), %s972_s6, 4294966784  ;;  %s29_s17 = sadd.s32 1, %s1620_s17   ;;  %s2143_s27 = sld [smem:[#allocation17_spill]] }
 0x2c2   : > { %p2008_p4 = scmp.ge.s32.totalorder %s29_s17, 10   ;;  %s2144_s11 = sld [smem:[#allocation21_spill]] }
 0x2c3   : > { %s2145_s13 = sld [smem:[#allocation22_spill]]  ;;  %s2149_s28 = smov %s1580_s29 }
 0x2c4   : > { %s2146_s5 = sld [smem:[#allocation24_spill]]  ;;  %s2150_s29 = smov %s1846_s14 }
 0x2c5   : > { %s2147_s21 = sld [smem:[#allocation26_spill]]  ;;  %s2151_s30 = smov %s1588_s9 }
 0x2c6   : > { %s2148_s16 = sld [smem:[#allocation28_spill]]  ;;  %s2152_s9 = smov %s1592_s10 }
 0x2c7   : > { %s2153_s10 = smov %s1843_s8  ;;  %s2154_s12 = smov %s1612_s15 }
 0x2c8   :  { %28 = sbr.rel (!%p2008_p4) target bundleno = 23 (0x17), region = 133 }
 0x2ca   : > { %s2155_s14 = smov %s2146_s5 }
 0x2cb   : > { %s2156_s15 = smov %s2147_s21 }
 0x2cd   :  { %988 = vsyncpa [#allocation5], 1 }
 0x2ce   :  { %990 = vsyncpa [#allocation5 + $0x1], 1 }
 0x2cf   :  { %991 = vsyncpa [#allocation9], 1 }
 0x2d0   :  { %993 = vsyncpa [#allocation9 + $0x1], 1 }
 0x2d1   :  { %994 = vsyncpa [#allocation6], 1 }
 0x2d2   :  { %996 = vsyncpa [#allocation6 + $0x1], 1 }
 0x2d3   :  { %997 = vsyncpa [#allocation7], 1 }
 0x2d4   :  { %999 = vsyncpa [#allocation7 + $0x1], 1 }

</bundles_post_ra>
